<compile_context>
chip_gen: v7x
topology: tpu7x:2x2x1
jax: 0.10.0
libtpu: 0.0.40
codegen_flags: <defaults>
</compile_context>

<pallas_src>
import functools

import jax
import jax.numpy as jnp
from jax import lax
from jax.experimental import pallas as pl
from jax.experimental.pallas import tpu as pltpu

LANES = 128
MAX_BLOCK_ROWS = 2048  # 2048*128*4B = 1 MiB per f32 input block


def _focal_loss_kernel(x_ref, t_ref, out_ref, acc_ref, *,
                       gamma, alpha, n_valid, tail_valid, need_mask,
                       reduction):
    i = pl.program_id(0)
    last = pl.num_programs(0) - 1

    @pl.when(i == 0)
    def _():
        acc_ref[...] = jnp.zeros_like(acc_ref)

    x = x_ref[...].astype(jnp.float32)
    t = t_ref[...].astype(jnp.float32)

    # Shared exponential: e = exp(-|x|) drives both the numerically stable
    # softplus term of BCE-with-logits and sigmoid(x).
    e = jnp.exp(-jnp.abs(x))
    softplus = jnp.log1p(e)
    ce = jnp.maximum(x, 0.0) - x * t + softplus          # BCE-with-logits

    inv = 1.0 / (1.0 + e)
    p = jnp.where(x >= 0.0, inv, e * inv)                # sigmoid(x)

    p_t = p * t + (1.0 - p) * (1.0 - t)
    q = 1.0 - p_t
    # (1 - p_t) ** gamma without pow for small integer gamma (pow is 2 EUP ops).
    if float(gamma) == int(gamma) and 0 <= int(gamma) <= 4:
        mod = jnp.ones_like(q)
        for _ in range(int(gamma)):
            mod = mod * q
    else:
        mod = q ** gamma
    loss = ce * mod

    if alpha is not None:
        alpha_t = alpha * t + (1.0 - alpha) * (1.0 - t)
        loss = alpha_t * loss

    if need_mask:
        # Only the last grid block contains zero-padding.
        @pl.when(i != last)
        def _():
            acc_ref[...] += loss

        @pl.when(i == last)
        def _():
            shape = loss.shape
            row_ids = lax.broadcasted_iota(jnp.int32, shape, 0)
            col_ids = lax.broadcasted_iota(jnp.int32, shape, 1)
            flat_ids = row_ids * shape[1] + col_ids
            acc_ref[...] += jnp.where(flat_ids < tail_valid, loss, 0.0)
    else:
        acc_ref[...] += loss

    @pl.when(i == last)
    def _():
        total = jnp.sum(acc_ref[...])
        if reduction == "mean":
            out_ref[0, 0] = total / jnp.float32(n_valid)
        else:  # 'sum'
            out_ref[0, 0] = total
    # TODO(synk): reduction='none' (full per-element output) not wired up; the
    # module default is 'mean'.


def focal_loss(inputs, targets, *, gamma=2.0, alpha=None, reduction="mean"):
    assert reduction in ("mean", "sum")
    n_valid = int(inputs.size)

    # Keep native dtype through the DMA; cast to f32 inside the kernel.
    x = inputs.reshape(-1)
    t = targets.reshape(-1)

    rows_total = pl.cdiv(n_valid, LANES)
    block_rows = min(MAX_BLOCK_ROWS, ((rows_total + 7) // 8) * 8)
    rows_padded = pl.cdiv(rows_total, block_rows) * block_rows
    padded_elems = rows_padded * LANES
    if padded_elems != n_valid:
        x = jnp.pad(x, (0, padded_elems - n_valid))
        t = jnp.pad(t, (0, padded_elems - n_valid))

    x2 = x.reshape(rows_padded, LANES)
    t2 = t.reshape(rows_padded, LANES)
    num_blocks = rows_padded // block_rows
    block_elems = block_rows * LANES
    tail_valid = n_valid - (num_blocks - 1) * block_elems
    need_mask = padded_elems != n_valid

    kernel = functools.partial(
        _focal_loss_kernel,
        gamma=float(gamma),
        alpha=(None if alpha is None else float(alpha)),
        n_valid=n_valid,
        tail_valid=tail_valid,
        need_mask=need_mask,
        reduction=reduction,
    )

    out = pl.pallas_call(
        kernel,
        out_shape=jax.ShapeDtypeStruct((1, 1), jnp.float32),
        grid_spec=pltpu.PrefetchScalarGridSpec(
            num_scalar_prefetch=0,
            grid=(num_blocks,),
            in_specs=[
                pl.BlockSpec((block_rows, LANES), lambda i: (i, 0)),
                pl.BlockSpec((block_rows, LANES), lambda i: (i, 0)),
            ],
            out_specs=pl.BlockSpec(memory_space=pltpu.MemorySpace.SMEM),
            scratch_shapes=[pltpu.VMEM((block_rows, LANES), jnp.float32)],
        ),
        compiler_params=pltpu.CompilerParams(
            dimension_semantics=("arbitrary",)),
    )(x2, t2)
    return out[0, 0]


def focal_loss_ref(inputs, targets, *, gamma=2.0, alpha=None, reduction="mean"):
    x = inputs.astype(jnp.float32)
    t = targets.astype(jnp.float32)
    p = jax.nn.sigmoid(x)
    ce = jnp.maximum(x, 0.0) - x * t + jnp.log1p(jnp.exp(-jnp.abs(x)))
    p_t = p * t + (1.0 - p) * (1.0 - t)
    loss = ce * (1.0 - p_t) ** gamma
    if alpha is not None:
        alpha_t = alpha * t + (1.0 - alpha) * (1.0 - t)
        loss = alpha_t * loss
    if reduction == "mean":
        return loss.mean()
    return loss.sum()


if __name__ == "__main__":
    key = jax.random.PRNGKey(0)
    k1, k2 = jax.random.split(key)

    # Small shapes consistent with a dense-prediction use of FocalLoss (NCHW).
    shape = (2, 4, 16, 16)
    logits = jax.random.normal(k1, shape, dtype=jnp.float32) * 2.0
    targets = (jax.random.uniform(k2, shape) > 0.5).astype(jnp.float32)

    # Default config: gamma=2, alpha=None, reduction='mean'.
    out = focal_loss(logits, targets, gamma=2.0, alpha=None, reduction="mean")
    out = jax.block_until_ready(out)
    ref = focal_loss_ref(logits, targets, gamma=2.0, alpha=None,
                         reduction="mean")
    assert jnp.allclose(out, ref, rtol=1e-5, atol=1e-6), (out, ref)

    # Also exercise the alpha branch and 'sum' reduction.
    out2 = focal_loss(logits, targets, gamma=2.0, alpha=0.25, reduction="sum")
    out2 = jax.block_until_ready(out2)
    ref2 = focal_loss_ref(logits, targets, gamma=2.0, alpha=0.25,
                          reduction="sum")
    assert jnp.allclose(out2, ref2, rtol=1e-5, atol=1e-5), (out2, ref2)

    print("KERNEL_OK")
</pallas_src>

<mosaic_0001>
module attributes {stable_mosaic.version = 11 : i64} {
  func.func @_focal_loss_kernel(%arg0: i32, %arg1: memref<16x128xf32, #tpu.memory_space<vmem>>, %arg2: memref<16x128xf32, #tpu.memory_space<vmem>>, %arg3: memref<1x1xf32, #tpu.memory_space<smem>>, %arg4: memref<16x128xf32, #tpu.memory_space<vmem>>) attributes {dimension_semantics = [#tpu.dimension_semantics<arbitrary>], iteration_bounds = array<i64: 1>, scalar_prefetch = 0 : i64, scratch_operands = 1 : i64, tpu.core_type = #tpu.core_type<tc>, window_params = [{transform_indices = @transform_0, window_bounds = array<i64: 16, 128>}, {transform_indices = @transform_1, window_bounds = array<i64: 16, 128>}, {transform_indices = @transform_2, window_bounds = array<i64: 1, 1>}]} {
    %c0_i32 = arith.constant 0 : i32
    %0 = arith.cmpi eq, %arg0, %c0_i32 : i32
    %1 = arith.extui %0 : i1 to i32
    %c0_i32_0 = arith.constant 0 : i32
    %2 = arith.cmpi ne, %1, %c0_i32_0 : i32
    scf.if %2 {
      %cst_18 = arith.constant 0.000000e+00 : f32
      %42 = vector.broadcast %cst_18 : f32 to vector<16x128xf32>
      %c0_19 = arith.constant 0 : index
      %c0_20 = arith.constant 0 : index
      %43 = vector.load %arg4[%c0_19, %c0_20] : memref<16x128xf32, #tpu.memory_space<vmem>>, vector<16x128xf32>
      tpu.vector_store %arg4[%c0_19, %c0_20], %42 {strides = array<i32>} : memref<16x128xf32, #tpu.memory_space<vmem>>, vector<16x128xf32>,
    } else {
    }
    %c0 = arith.constant 0 : index
    %c0_1 = arith.constant 0 : index
    %3 = vector.load %arg1[%c0, %c0_1] : memref<16x128xf32, #tpu.memory_space<vmem>>, vector<16x128xf32>
    %c0_2 = arith.constant 0 : index
    %c0_3 = arith.constant 0 : index
    %4 = vector.load %arg2[%c0_2, %c0_3] : memref<16x128xf32, #tpu.memory_space<vmem>>, vector<16x128xf32>
    %5 = math.absf %3 : vector<16x128xf32>
    %cst = arith.constant 0.000000e+00 : f32
    %6 = vector.broadcast %cst : f32 to vector<16x128xf32>
    %7 = arith.subf %6, %5 : vector<16x128xf32>
    %8 = math.exp %7 : vector<16x128xf32>
    %9 = math.log1p %8 : vector<16x128xf32>
    %cst_4 = arith.constant 0.000000e+00 : f32
    %10 = vector.broadcast %cst_4 : f32 to vector<16x128xf32>
    %11 = arith.maximumf %3, %10 : vector<16x128xf32>
    %12 = arith.mulf %3, %4 : vector<16x128xf32>
    %13 = arith.subf %11, %12 : vector<16x128xf32>
    %14 = arith.addf %13, %9 : vector<16x128xf32>
    %cst_5 = arith.constant 1.000000e+00 : f32
    %15 = vector.broadcast %cst_5 : f32 to vector<16x128xf32>
    %16 = arith.addf %15, %8 : vector<16x128xf32>
    %cst_6 = arith.constant 1.000000e+00 : f32
    %17 = vector.broadcast %cst_6 : f32 to vector<16x128xf32>
    %18 = arith.divf %17, %16 : vector<16x128xf32>
    %cst_7 = arith.constant 0.000000e+00 : f32
    %19 = vector.broadcast %cst_7 : f32 to vector<16x128xf32>
    %20 = arith.cmpf oge, %3, %19 : vector<16x128xf32>
    %21 = arith.mulf %8, %18 : vector<16x128xf32>
    %22 = arith.select %20, %18, %21 : vector<16x128xi1>, vector<16x128xf32>
    %23 = arith.mulf %22, %4 : vector<16x128xf32>
    %cst_8 = arith.constant 1.000000e+00 : f32
    %24 = vector.broadcast %cst_8 : f32 to vector<16x128xf32>
    %25 = arith.subf %24, %22 : vector<16x128xf32>
    %cst_9 = arith.constant 1.000000e+00 : f32
    %26 = vector.broadcast %cst_9 : f32 to vector<16x128xf32>
    %27 = arith.subf %26, %4 : vector<16x128xf32>
    %28 = arith.mulf %25, %27 : vector<16x128xf32>
    %29 = arith.addf %23, %28 : vector<16x128xf32>
    %cst_10 = arith.constant 1.000000e+00 : f32
    %30 = vector.broadcast %cst_10 : f32 to vector<16x128xf32>
    %31 = arith.subf %30, %29 : vector<16x128xf32>
    %cst_11 = arith.constant 1.000000e+00 : f32
    %32 = vector.broadcast %cst_11 : f32 to vector<16x128xf32>
    %33 = arith.mulf %32, %31 : vector<16x128xf32>
    %34 = arith.mulf %33, %31 : vector<16x128xf32>
    %35 = arith.mulf %14, %34 : vector<16x128xf32>
    %c0_12 = arith.constant 0 : index
    %c0_13 = arith.constant 0 : index
    %36 = vector.load %arg4[%c0_12, %c0_13] : memref<16x128xf32, #tpu.memory_space<vmem>>, vector<16x128xf32>
    %37 = arith.addf %36, %35 : vector<16x128xf32>
    %c0_14 = arith.constant 0 : index
    %c0_15 = arith.constant 0 : index
    %38 = vector.load %arg4[%c0_14, %c0_15] : memref<16x128xf32, #tpu.memory_space<vmem>>, vector<16x128xf32>
    tpu.vector_store %arg4[%c0_14, %c0_15], %37 {strides = array<i32>} : memref<16x128xf32, #tpu.memory_space<vmem>>, vector<16x128xf32>,
    %c0_i32_16 = arith.constant 0 : i32
    %39 = arith.cmpi eq, %arg0, %c0_i32_16 : i32
    %40 = arith.extui %39 : i1 to i32
    %c0_i32_17 = arith.constant 0 : i32
    %41 = arith.cmpi ne, %40, %c0_i32_17 : i32
    scf.if %41 {
      %c0_18 = arith.constant 0 : index
      %c0_19 = arith.constant 0 : index
      %42 = vector.load %arg4[%c0_18, %c0_19] : memref<16x128xf32, #tpu.memory_space<vmem>>, vector<16x128xf32>
      %43 = vector.shape_cast %42 : vector<16x128xf32> to vector<1x16x128xf32>
      %cst_20 = arith.constant dense<0.000000e+00> : vector<1xf32>
      %44 = vector.multi_reduction <add>, %43, %cst_20 [1, 2] : vector<1x16x128xf32> to vector<1xf32>
      %45 = vector.shape_cast %44 : vector<1xf32> to vector<1x1x1xf32>
      %46 = vector.extract %45[0, 0, 0] : f32 from vector<1x1x1xf32>
      %cst_21 = arith.constant 2.048000e+03 : f32
      %47 = arith.divf %46, %cst_21 : f32
      %c0_22 = arith.constant 0 : index
      %c0_23 = arith.constant 0 : index
      %48 = memref.load %arg3[%c0_22, %c0_23] : memref<1x1xf32, #tpu.memory_space<smem>>
      memref.store %47, %arg3[%c0_22, %c0_23] : memref<1x1xf32, #tpu.memory_space<smem>>
    } else {
    }
    return
  }
  func.func @transform_0(%arg0: i32) -> (i32, i32) {
    %c0_i32 = arith.constant 0 : i32
    %c0_i32_0 = arith.constant 0 : i32
    return %arg0, %c0_i32 : i32, i32
  }
  func.func @transform_1(%arg0: i32) -> (i32, i32) {
    %c0_i32 = arith.constant 0 : i32
    %c0_i32_0 = arith.constant 0 : i32
    return %arg0, %c0_i32 : i32, i32
  }
  func.func @transform_2(%arg0: i32) -> (i32, i32) {
    %c0_i32 = arith.constant 0 : i32
    %c0_i32_0 = arith.constant 0 : i32
    %c0_i32_1 = arith.constant 0 : i32
    return %c0_i32, %c0_i32_0 : i32, i32
  }
}

</mosaic_0001>

<bundles_post_ra>
// kernel: tpu_custom_call.1
= control target key start
LH: loop header
LB: loop body
LE: loop exit
PB: predicated region body
PF: predicated region fallthrough
CT: control target
= control target key end

     0   :  { %7 = vsyncpa [#allocation4], 0  ;;  %s294_s0 = inlined_call_operand.hbm [shape: f32[16,128], index: 0, kind: input, shape index: {}]   ;;  %s295_s1 = inlined_call_operand.hbm [shape: f32[16,128], index: 1, kind: input, shape index: {}]   ;;  %s296_s2 = inlined_call_operand.hbm [shape: f32[1,1], index: 2, kind: output, shape index: {}]  }
   0x1   :  { %8 = vsyncpa [#allocation7], 0 }
   0x2   :  { %9 = vsyncpa [#allocation5], 0  ;;  %s232_s9 = smov [#allocation3]   ;;  %s172_s13 = scalar_lea.hbm %s294_s0, 256 }
   0x3   :  { %s15_s10 = sshll.u32 %s232_s9, 4  ;;  %p173_p0 = scmp.ne.s32.totalorder %s294_s0, %s172_s13  ;;  %s16_s10 = int_to_ptr.vmem [resolvable:$true] %s15_s10 }
   0x4   :  { %p176_p1 = scmp.lt.u32.totalorder %s172_s13, %s294_s0 }
   0x6   :  { %p178_p2 = pnand %p176_p1, %p173_p0 }
   0x8   :  { %181 = shalt.err (!%p178_p2)
}
   0x9   :  { %s182_s18 = scalar_lea.vmem %s16_s10, 256  ;;  %p187_p4 = scmp.lt.s32.totalorder %s16_s10, %s16_s10 }
   0xa   :  { %p183_p3 = scmp.ne.s32.totalorder %s16_s10, %s182_s18  ;;  %p188_p5 = scmp.lt.s32.totalorder %s182_s18, %s182_s18 }
   0xc   :  { %p189_p6 = por %p188_p5, %p187_p4 }
   0xe   :  { %p190_p7 = pnand %p189_p6, %p183_p3 }
  0x10   :  { %193 = shalt.err (!%p190_p7)
}
  0x11   :  { %s233_s19 = smov 128   ;;  %s234_s20 = smov 8  }
  0x12   :  { %21 = dma.hbm_to_vmem [thread:$0]  %s294_s0, 256, %s16_s10, [#allocation4], %s233_s19, %s233_s19, %s234_s20  }
  0x13   :  { %s235_s23 = smov [#allocation6]   ;;  %s194_s27 = scalar_lea.hbm %s295_s1, 256 }
  0x14   :  { %s27_s24 = sshll.u32 %s235_s23, 4  ;;  %p195_p8 = scmp.ne.s32.totalorder %s295_s1, %s194_s27  ;;  %s28_s24 = int_to_ptr.vmem [resolvable:$true] %s27_s24 }
  0x15   :  { %p198_p9 = scmp.lt.u32.totalorder %s194_s27, %s295_s1 }
  0x17   :  { %p200_p10 = pnand %p198_p9, %p195_p8 }
  0x19   :  { %203 = shalt.err (!%p200_p10)
}
  0x1a   :  { %s204_s4 = scalar_lea.vmem %s28_s24, 256  ;;  %p209_p12 = scmp.lt.s32.totalorder %s28_s24, %s28_s24 }
  0x1b   :  { %p205_p11 = scmp.ne.s32.totalorder %s28_s24, %s204_s4  ;;  %p210_p13 = scmp.lt.s32.totalorder %s204_s4, %s204_s4 }
  0x1d   :  { %p211_p0 = por %p210_p13, %p209_p12 }
  0x1f   :  { %p212_p1 = pnand %p211_p0, %p205_p11 }
  0x21   :  { %215 = shalt.err (!%p212_p1)
}
  0x22   :  { %33 = dma.hbm_to_vmem [thread:$0]  %s295_s1, 256, %s28_s24, [#allocation7], %s233_s19, %s233_s19, %s234_s20  }
  0x23   :  { %226 = dma.done.wait [#allocation4], 256  }
  0x24   :  { %227 = vsyncadd [#allocation4], 4294967040 }
  0x25   :  { %228 = dma.done.wait [#allocation7], 256  }
  0x26   :  { %229 = vsyncadd [#allocation7], 4294967040  ;;  %v46_v0 = vld [vmem:[#allocation3] sm:$0xff]  ;;  %v47_v1 = vld [vmem:[#allocation3 + $0x8] sm:$0xff]  ;;  %s216_s9 = scalar_lea.hbm %s296_s2, 16 }
  0x27   :  { %v50_v2 = vand.u32 2147483647, %v46_v0  ;;  %v51_v3 = vand.u32 2147483647, %v47_v1  ;;  %v48_v17 = vld [vmem:[#allocation6] sm:$0xff]  ;;  %v49_v18 = vld [vmem:[#allocation6 + $0x8] sm:$0xff]  ;;  %p217_p2 = scmp.ne.s32.totalorder %s296_s2, %s216_s9  ;;  %p220_p3 = scmp.lt.u32.totalorder %s216_s9, %s296_s2 }
  0x28   :  { %v76_v22 = vmax.f32 %v46_v0, 0.0  ;;  %v77_v23 = vmax.f32 %v47_v1, 0.0  ;;  %v78_v24 = vmul.f32 %v48_v17, %v46_v0  ;;  %vm90_vm0 = vcmp.ge.f32.partialorder %v46_v0, 0.0 }
  0x29   :  { %v52_v4 = vsub.f32 0.0, %v50_v2  ;;  %v53_v5 = vsub.f32 0.0, %v51_v3  ;;  %v79_v27 = vmul.f32 %v49_v18, %v47_v1  ;;  %vm91_vm1 = vcmp.ge.f32.partialorder %v47_v1, 0.0  ;;  %p222_p4 = pnand %p220_p3, %p217_p2 }
  0x2a   :  { %v100_v31 = vsub.f32 1.0, %v48_v17  ;;  %v101_v32 = vsub.f32 1.0, %v49_v18  ;;  %v80_v43 = vsub.f32 %v76_v22, %v78_v24 }
  0x2b   :  { %v54_v6 = vmul.f32 1.442695, %v52_v4  ;;  %v56_v7 = vmul.f32 1.442695, %v53_v5  ;;  %v81_v46 = vsub.f32 %v77_v23, %v79_v27 }
  0x2d   :  { %160 = vpow2.f32 %v54_v6 }
  0x2e   :  { %162 = vpow2.f32 %v56_v7 }
  0x37   :  { %v161_v8 = vpop.eup %160 }
  0x38   :  { %v163_v9 = vpop.eup %162  ;;  %v58_v10 = vadd.f32 1.0, %v161_v8  ;;  %v61_v12 = vmul.f32 -0.5, %v161_v8  ;;  %v64_v15 = vand.u32 2147483647, %v161_v8 }
  0x39   :  { %v67_v11 = vadd.f32 1.0, %v163_v9  ;;  %v70_v13 = vmul.f32 -0.5, %v163_v9  ;;  %v73_v26 = vand.u32 2147483647, %v163_v9 }
  0x3a   :  { %164 = vlog2.f32 %v58_v10  ;;  %v62_v19 = vadd.f32 1.0, %v61_v12  ;;  %vm276_vm2 = vcmp.lt.f32.partialorder %v64_v15, 0.0004427343 }
  0x3b   :  { %166 = vlog2.f32 %v67_v11  ;;  %v71_v20 = vadd.f32 1.0, %v70_v13  ;;  %vm74_vm3 = vcmp.lt.f32.partialorder %v73_v26, 0.0004427343 }
  0x3c   :  { %168 = vrcp.f32 %v58_v10  ;;  %v63_v34 = vmul.f32 %v161_v8, %v62_v19 }
  0x3d   :  { %170 = vrcp.f32 %v67_v11  ;;  %v72_v35 = vmul.f32 %v163_v9, %v71_v20 }
  0x44   :  { %v165_v14 = vpop.eup %164 }
  0x45   :  { %v167_v16 = vpop.eup %166  ;;  %v60_v33 = vmul.f32 0.6931472, %v165_v14 }
  0x46   :  { %v169_v21 = vpop.eup %168  ;;  %v69_v37 = vmul.f32 0.6931472, %v167_v16 }
  0x47   :  { %v171_v25 = vpop.eup %170  ;;  %v92_v28 = vmul.f32 %v169_v21, %v161_v8  ;;  %v66_v45 = vsel %vm276_vm2, %v63_v34, %v60_v33 }
  0x48   :  { %v93_v30 = vmul.f32 %v171_v25, %v163_v9  ;;  %v75_v48 = vsel %vm74_vm3, %v72_v35, %v69_v37  ;;  %v82_v51 = vadd.f32 %v80_v43, %v66_v45 }
  0x49   :  { %v94_v36 = vsel %vm90_vm0, %v169_v21, %v92_v28  ;;  %v83_v53 = vadd.f32 %v81_v46, %v75_v48 }
  0x4a   :  { %v95_v38 = vsel %vm91_vm1, %v171_v25, %v93_v30  ;;  %v96_v39 = vmul.f32 %v94_v36, %v48_v17  ;;  %v98_v40 = vsub.f32 1.0, %v94_v36 }
  0x4b   :  { %v97_v41 = vmul.f32 %v95_v38, %v49_v18  ;;  %v99_v42 = vsub.f32 1.0, %v95_v38 }
  0x4c   :  { %v102_v44 = vmul.f32 %v100_v31, %v98_v40 }
  0x4d   :  { %v103_v47 = vmul.f32 %v101_v32, %v99_v42 }
  0x4e   :  { %v104_v49 = vadd.f32 %v102_v44, %v96_v39 }
  0x4f   :  { %v105_v50 = vadd.f32 %v103_v47, %v97_v41 }
  0x50   :  { %v106_v52 = vsub.f32 1.0, %v104_v49 }
  0x51   :  { %v107_v54 = vsub.f32 1.0, %v105_v50 }
  0x52   :  { %v108_v55 = vmul.f32 %v106_v52, %v106_v52 }
  0x53   :  { %v109_v56 = vmul.f32 %v107_v54, %v107_v54 }
  0x54   :  { %v110_v57 = vmul.f32 %v108_v55, %v82_v51 }
  0x55   :  { %v111_v58 = vmul.f32 %v109_v56, %v83_v53 }
  0x57   :  { %v123_v59 = vadd.f32 %v111_v58, %v110_v57 }
  0x59   :  { %124 = vadd.xlane.f32.xlu0 %v123_v59 }
  0xe6   :  { %v125_v60 = vpop.xlane.xlu0 %124 }
  0xe7   :  { %v126_v61 = vrot.slane %v125_v60, 4 }
  0xe9   :  { %v127_v62 = vadd.f32 %v126_v61, %v125_v60 }
  0xeb   :  { %v128_v63 = vrot.slane %v127_v62, 2 }
  0xed   :  { %v129_v0 = vadd.f32 %v128_v63, %v127_v62 }
  0xef   :  { %v130_v1 = vrot.slane %v129_v0, 1 }
  0xf1   :  { %v131_v2 = vadd.f32 %v130_v1, %v129_v0 }
  0xf3   :  { %153 = vpush %v131_v2 }
 0x124   :  { %s154_s1 = spop %153 }
 0x125   :  { %s135_s6 = smul.f32 0.00048828125, %s154_s1 }
 0x127   :  { %137 = sst [smem:[#allocation8]] %s135_s6 }
 0x128   :  { %225 = shalt.err (!%p222_p4)
}
 0x129   :  { %s236_s14 = smov [#allocation8]  }
 0x12a   :  { %145 = dma.smem_to_hbm %s236_s14, 16, %s296_s2, [#allocation5]  }
 0x12b   :  { %230 = dma.done.wait [#allocation5], 16  }
 0x12c   :  { %231 = vsyncadd [#allocation5], 4294967280 }
 0x12d   :  { %149 = sfence }
 0x12e   :  { %150 = vsyncpa [#allocation4], 1 }
 0x12f   :  { %151 = vsyncpa [#allocation7], 1 }
 0x130   :  { %152 = vsyncpa [#allocation5], 1 }

</bundles_post_ra>
